<compile_context>
chip_gen: v7x
topology: tpu7x:2x2x1
jax: 0.10.0
libtpu: 0.0.40
codegen_flags: <defaults>
</compile_context>

<pallas_src>
import jax
import jax.numpy as jnp
from jax.experimental import pallas as pl
from jax.experimental.pallas import tpu as pltpu


def lstm_fc_kernel(xproj_ref, whh_ref, fcw_ref, fcb_ref, out_ref):
    """Whole-sequence LSTM recurrence + final Linear, fully VMEM-resident.

    xproj_ref : (T, B, 4H)  hoisted input projection x@W_ih + b, time-major, f32
                            (g-gate columns 2H:3H pre-scaled by 2)
    whh_ref   : (H, 4H)     hidden->gates weights (pre-transposed), f32
                            (g-gate columns 2H:3H pre-scaled by 2)
    fcw_ref   : (1, H)      final linear weight, f32
    fcb_ref   : (1, 1)      final linear bias, SMEM scalar
    out_ref   : (B, 1)      fc(h_T)
    """
    T = xproj_ref.shape[0]
    H = whh_ref.shape[0]

    xp = xproj_ref[...]        # (T, B, 4H)
    whh = whh_ref[...]         # (H, 4H), loop-invariant MXU RHS

    def activate(gates):
        # g block already holds 2*g, so tanh(g) = 2*sigmoid(2g) - 1 falls out
        # of a single full-width sigmoid pass (one EUP push per step).
        s = jax.nn.sigmoid(gates)              # (B, 4H)
        i_g = s[:, 0:H]
        f_g = s[:, H:2 * H]
        g_g = 2.0 * s[:, 2 * H:3 * H] - 1.0    # VPU fixup -> tanh(g)
        o_g = s[:, 3 * H:4 * H]
        return i_g, f_g, g_g, o_g

    # ---- t = 0 peeled: h = c = 0, so gates = x_proj[0]; no MXU, no f*c.
    i_g, f_g, g_g, o_g = activate(xp[0])
    c = i_g * g_g
    h = o_g * jnp.tanh(c)

    # ---- Remaining steps, fully unrolled (T static, indices compile-time).
    for t in range(1, T):
        gates = xp[t] + jnp.dot(h, whh, preferred_element_type=jnp.float32)
        i_g, f_g, g_g, o_g = activate(gates)
        c = f_g * c + i_g * g_g
        h = o_g * jnp.tanh(c)

    # ---- Final Linear (H -> 1): VPU multiply + lane reduce (no N=1 matmul).
    out_ref[...] = (
        jnp.sum(h * fcw_ref[...], axis=-1, keepdims=True) + fcb_ref[0, 0]
    )


def simple_lstm_forward(x, params):
    """x: (B, T, I) batch-first, like the PyTorch module. Returns (B, 1)."""
    w_ih, w_hh, b_ih, b_hh, fc_w, fc_b = params
    B, T, I = x.shape
    H = w_hh.shape[1]

    # Pad batch up to a full f32 sublane group; for throughput, callers should
    # pack many sequences per call (B_pad 128-256) — same serial latency.
    B_pad = max(8, ((B + 7) // 8) * 8)
    x_p = jnp.pad(x.astype(jnp.float32), ((0, B_pad - B), (0, 0), (0, 0)))
    x_tm = jnp.transpose(x_p, (1, 0, 2))                         # (T, B_pad, I)

    # Pre-scale the g-gate column block (2H:3H) by 2 so the kernel can use the
    # tanh(g) = 2*sigmoid(2g) - 1 identity with a single sigmoid pass.
    gate_scale = jnp.concatenate([
        jnp.ones((2 * H,), jnp.float32),
        jnp.full((H,), 2.0, jnp.float32),
        jnp.ones((H,), jnp.float32),
    ])                                                           # (4H,)

    wih_t = w_ih.T.astype(jnp.float32) * gate_scale[None, :]     # (I, 4H)
    whh_t = w_hh.T.astype(jnp.float32) * gate_scale[None, :]     # (H, 4H)
    b = ((b_ih + b_hh).astype(jnp.float32) * gate_scale).reshape(1, 4 * H)

    # Hoisted input projection (independent of h): computed once in the wrapper
    # and fed to the kernel as a dense (T, B_pad, 4H) slab (~16 KB of DMA).
    x_proj = jnp.einsum("tbi,ig->tbg", x_tm, wih_t) + b[None, :, :]
    x_proj = x_proj.astype(jnp.float32)                          # (T, B_pad, 4H)

    fcw = fc_w.reshape(1, H).astype(jnp.float32)                 # (1, H)
    fcb = fc_b.reshape(1, 1).astype(jnp.float32)                 # (1, 1) -> SMEM

    vmem = pl.BlockSpec(memory_space=pltpu.MemorySpace.VMEM)
    smem = pl.BlockSpec(memory_space=pltpu.MemorySpace.SMEM)
    out = pl.pallas_call(
        lstm_fc_kernel,
        out_shape=jax.ShapeDtypeStruct((B_pad, 1), jnp.float32),
        in_specs=[vmem, vmem, vmem, smem],
        out_specs=vmem,
    )(x_proj, whh_t, fcw, fcb)
    return out[:B]


def simple_lstm_reference(x, params):
    """Pure-JAX reference mirroring torch nn.LSTM + nn.Linear forward."""
    w_ih, w_hh, b_ih, b_hh, fc_w, fc_b = params
    B, T, I = x.shape
    H = w_hh.shape[1]
    h = jnp.zeros((B, H), jnp.float32)
    c = jnp.zeros((B, H), jnp.float32)
    for t in range(T):
        g = x[:, t, :] @ w_ih.T + b_ih + h @ w_hh.T + b_hh
        i_g = jax.nn.sigmoid(g[:, 0:H])
        f_g = jax.nn.sigmoid(g[:, H:2 * H])
        g_g = jnp.tanh(g[:, 2 * H:3 * H])
        o_g = jax.nn.sigmoid(g[:, 3 * H:4 * H])
        c = f_g * c + i_g * g_g
        h = o_g * jnp.tanh(c)
    return h @ fc_w.T + fc_b


def init_params(key, input_size=1, hidden_size=16):
    """Deterministic init mirroring PyTorch shapes: U(-1/sqrt(H), 1/sqrt(H))."""
    H = hidden_size
    I = input_size
    bound = 1.0 / jnp.sqrt(jnp.float32(H))
    ks = jax.random.split(key, 6)
    w_ih = jax.random.uniform(ks[0], (4 * H, I), jnp.float32, -bound, bound)
    w_hh = jax.random.uniform(ks[1], (4 * H, H), jnp.float32, -bound, bound)
    b_ih = jax.random.uniform(ks[2], (4 * H,), jnp.float32, -bound, bound)
    b_hh = jax.random.uniform(ks[3], (4 * H,), jnp.float32, -bound, bound)
    fc_w = jax.random.uniform(ks[4], (1, H), jnp.float32, -bound, bound)
    fc_b = jax.random.uniform(ks[5], (1,), jnp.float32, -bound, bound)
    return (w_ih, w_hh, b_ih, b_hh, fc_w, fc_b)


if __name__ == "__main__":
    key = jax.random.PRNGKey(0)
    k_x, k_p = jax.random.split(key)

    B, T, I, H = 2, 8, 1, 16
    x = jax.random.normal(k_x, (B, T, I), jnp.float32)
    params = init_params(k_p, input_size=I, hidden_size=H)

    out = simple_lstm_forward(x, params)
    out = jax.block_until_ready(out)
    assert out.shape == (B, 1) and out.dtype == jnp.float32

    ref = jax.block_until_ready(simple_lstm_reference(x, params))
    assert jnp.allclose(out, ref, rtol=1e-3, atol=1e-3)

    print("KERNEL_OK")
</pallas_src>

<mosaic_0001>
module attributes {stable_mosaic.version = 11 : i64} {
  func.func @lstm_fc_kernel(%arg0: memref<8x8x64xf32, #tpu.memory_space<vmem>>, %arg1: memref<16x64xf32, #tpu.memory_space<vmem>>, %arg2: memref<1x16xf32, #tpu.memory_space<vmem>>, %arg3: memref<1x1xf32, #tpu.memory_space<smem>>, %arg4: memref<8x1xf32, #tpu.memory_space<vmem>>) attributes {dimension_semantics = [], scalar_prefetch = 0 : i64, scratch_operands = 0 : i64, tpu.core_type = #tpu.core_type<tc>} {
    %c0 = arith.constant 0 : index
    %c0_0 = arith.constant 0 : index
    %c0_1 = arith.constant 0 : index
    %0 = vector.load %arg0[%c0, %c0_0, %c0_1] : memref<8x8x64xf32, #tpu.memory_space<vmem>>, vector<8x8x64xf32>
    %c0_2 = arith.constant 0 : index
    %c0_3 = arith.constant 0 : index
    %1 = vector.load %arg1[%c0_2, %c0_3] : memref<16x64xf32, #tpu.memory_space<vmem>>, vector<16x64xf32>
    %2 = vector.extract_strided_slice %0 {offsets = [0, 0, 0], sizes = [1, 8, 64], strides = [1, 1, 1]} : vector<8x8x64xf32> to vector<1x8x64xf32>
    %3 = vector.shape_cast %2 : vector<1x8x64xf32> to vector<8x64xf32>
    %4 = arith.negf %3 : vector<8x64xf32>
    %5 = math.exp %4 : vector<8x64xf32>
    %cst = arith.constant 1.000000e+00 : f32
    %6 = vector.broadcast %cst : f32 to vector<8x64xf32>
    %7 = arith.addf %6, %5 : vector<8x64xf32>
    %8 = arith.divf %6, %7 : vector<8x64xf32>
    %9 = vector.extract_strided_slice %8 {offsets = [0, 0], sizes = [8, 16], strides = [1, 1]} : vector<8x64xf32> to vector<8x16xf32>
    %10 = vector.extract_strided_slice %8 {offsets = [0, 32], sizes = [8, 16], strides = [1, 1]} : vector<8x64xf32> to vector<8x16xf32>
    %cst_4 = arith.constant 2.000000e+00 : f32
    %11 = vector.broadcast %cst_4 : f32 to vector<8x16xf32>
    %12 = arith.mulf %11, %10 : vector<8x16xf32>
    %cst_5 = arith.constant 1.000000e+00 : f32
    %13 = vector.broadcast %cst_5 : f32 to vector<8x16xf32>
    %14 = arith.subf %12, %13 : vector<8x16xf32>
    %15 = vector.extract_strided_slice %8 {offsets = [0, 48], sizes = [8, 16], strides = [1, 1]} : vector<8x64xf32> to vector<8x16xf32>
    %16 = arith.mulf %9, %14 : vector<8x16xf32>
    %17 = math.tanh %16 : vector<8x16xf32>
    %18 = arith.mulf %15, %17 : vector<8x16xf32>
    %19 = vector.extract_strided_slice %0 {offsets = [1, 0, 0], sizes = [1, 8, 64], strides = [1, 1, 1]} : vector<8x8x64xf32> to vector<1x8x64xf32>
    %20 = vector.shape_cast %19 : vector<1x8x64xf32> to vector<8x64xf32>
    %cst_6 = arith.constant dense<0.000000e+00> : vector<8x64xf32>
    %21 = tpu.matmul %18, %1, %cst_6 {dimension_numbers = #tpu.dot_dimension_numbers<[1], [0], [0], [1], [0, 0, 1, 1], [], []>} : vector<8x16xf32>, vector<16x64xf32>, vector<8x64xf32> -> vector<8x64xf32>
    %22 = arith.addf %20, %21 : vector<8x64xf32>
    %23 = arith.negf %22 : vector<8x64xf32>
    %24 = math.exp %23 : vector<8x64xf32>
    %cst_7 = arith.constant 1.000000e+00 : f32
    %25 = vector.broadcast %cst_7 : f32 to vector<8x64xf32>
    %26 = arith.addf %25, %24 : vector<8x64xf32>
    %27 = arith.divf %25, %26 : vector<8x64xf32>
    %28 = vector.extract_strided_slice %27 {offsets = [0, 0], sizes = [8, 16], strides = [1, 1]} : vector<8x64xf32> to vector<8x16xf32>
    %29 = vector.extract_strided_slice %27 {offsets = [0, 16], sizes = [8, 16], strides = [1, 1]} : vector<8x64xf32> to vector<8x16xf32>
    %30 = vector.extract_strided_slice %27 {offsets = [0, 32], sizes = [8, 16], strides = [1, 1]} : vector<8x64xf32> to vector<8x16xf32>
    %cst_8 = arith.constant 2.000000e+00 : f32
    %31 = vector.broadcast %cst_8 : f32 to vector<8x16xf32>
    %32 = arith.mulf %31, %30 : vector<8x16xf32>
    %cst_9 = arith.constant 1.000000e+00 : f32
    %33 = vector.broadcast %cst_9 : f32 to vector<8x16xf32>
    %34 = arith.subf %32, %33 : vector<8x16xf32>
    %35 = vector.extract_strided_slice %27 {offsets = [0, 48], sizes = [8, 16], strides = [1, 1]} : vector<8x64xf32> to vector<8x16xf32>
    %36 = arith.mulf %29, %16 : vector<8x16xf32>
    %37 = arith.mulf %28, %34 : vector<8x16xf32>
    %38 = arith.addf %36, %37 : vector<8x16xf32>
    %39 = math.tanh %38 : vector<8x16xf32>
    %40 = arith.mulf %35, %39 : vector<8x16xf32>
    %41 = vector.extract_strided_slice %0 {offsets = [2, 0, 0], sizes = [1, 8, 64], strides = [1, 1, 1]} : vector<8x8x64xf32> to vector<1x8x64xf32>
    %42 = vector.shape_cast %41 : vector<1x8x64xf32> to vector<8x64xf32>
    %cst_10 = arith.constant dense<0.000000e+00> : vector<8x64xf32>
    %43 = tpu.matmul %40, %1, %cst_10 {dimension_numbers = #tpu.dot_dimension_numbers<[1], [0], [0], [1], [0, 0, 1, 1], [], []>} : vector<8x16xf32>, vector<16x64xf32>, vector<8x64xf32> -> vector<8x64xf32>
    %44 = arith.addf %42, %43 : vector<8x64xf32>
    %45 = arith.negf %44 : vector<8x64xf32>
    %46 = math.exp %45 : vector<8x64xf32>
    %cst_11 = arith.constant 1.000000e+00 : f32
    %47 = vector.broadcast %cst_11 : f32 to vector<8x64xf32>
    %48 = arith.addf %47, %46 : vector<8x64xf32>
    %49 = arith.divf %47, %48 : vector<8x64xf32>
    %50 = vector.extract_strided_slice %49 {offsets = [0, 0], sizes = [8, 16], strides = [1, 1]} : vector<8x64xf32> to vector<8x16xf32>
    %51 = vector.extract_strided_slice %49 {offsets = [0, 16], sizes = [8, 16], strides = [1, 1]} : vector<8x64xf32> to vector<8x16xf32>
    %52 = vector.extract_strided_slice %49 {offsets = [0, 32], sizes = [8, 16], strides = [1, 1]} : vector<8x64xf32> to vector<8x16xf32>
    %cst_12 = arith.constant 2.000000e+00 : f32
    %53 = vector.broadcast %cst_12 : f32 to vector<8x16xf32>
    %54 = arith.mulf %53, %52 : vector<8x16xf32>
    %cst_13 = arith.constant 1.000000e+00 : f32
    %55 = vector.broadcast %cst_13 : f32 to vector<8x16xf32>
    %56 = arith.subf %54, %55 : vector<8x16xf32>
    %57 = vector.extract_strided_slice %49 {offsets = [0, 48], sizes = [8, 16], strides = [1, 1]} : vector<8x64xf32> to vector<8x16xf32>
    %58 = arith.mulf %51, %38 : vector<8x16xf32>
    %59 = arith.mulf %50, %56 : vector<8x16xf32>
    %60 = arith.addf %58, %59 : vector<8x16xf32>
    %61 = math.tanh %60 : vector<8x16xf32>
    %62 = arith.mulf %57, %61 : vector<8x16xf32>
    %63 = vector.extract_strided_slice %0 {offsets = [3, 0, 0], sizes = [1, 8, 64], strides = [1, 1, 1]} : vector<8x8x64xf32> to vector<1x8x64xf32>
    %64 = vector.shape_cast %63 : vector<1x8x64xf32> to vector<8x64xf32>
    %cst_14 = arith.constant dense<0.000000e+00> : vector<8x64xf32>
    %65 = tpu.matmul %62, %1, %cst_14 {dimension_numbers = #tpu.dot_dimension_numbers<[1], [0], [0], [1], [0, 0, 1, 1], [], []>} : vector<8x16xf32>, vector<16x64xf32>, vector<8x64xf32> -> vector<8x64xf32>
    %66 = arith.addf %64, %65 : vector<8x64xf32>
    %67 = arith.negf %66 : vector<8x64xf32>
    %68 = math.exp %67 : vector<8x64xf32>
    %cst_15 = arith.constant 1.000000e+00 : f32
    %69 = vector.broadcast %cst_15 : f32 to vector<8x64xf32>
    %70 = arith.addf %69, %68 : vector<8x64xf32>
    %71 = arith.divf %69, %70 : vector<8x64xf32>
    %72 = vector.extract_strided_slice %71 {offsets = [0, 0], sizes = [8, 16], strides = [1, 1]} : vector<8x64xf32> to vector<8x16xf32>
    %73 = vector.extract_strided_slice %71 {offsets = [0, 16], sizes = [8, 16], strides = [1, 1]} : vector<8x64xf32> to vector<8x16xf32>
    %74 = vector.extract_strided_slice %71 {offsets = [0, 32], sizes = [8, 16], strides = [1, 1]} : vector<8x64xf32> to vector<8x16xf32>
    %cst_16 = arith.constant 2.000000e+00 : f32
    %75 = vector.broadcast %cst_16 : f32 to vector<8x16xf32>
    %76 = arith.mulf %75, %74 : vector<8x16xf32>
    %cst_17 = arith.constant 1.000000e+00 : f32
    %77 = vector.broadcast %cst_17 : f32 to vector<8x16xf32>
    %78 = arith.subf %76, %77 : vector<8x16xf32>
    %79 = vector.extract_strided_slice %71 {offsets = [0, 48], sizes = [8, 16], strides = [1, 1]} : vector<8x64xf32> to vector<8x16xf32>
    %80 = arith.mulf %73, %60 : vector<8x16xf32>
    %81 = arith.mulf %72, %78 : vector<8x16xf32>
    %82 = arith.addf %80, %81 : vector<8x16xf32>
    %83 = math.tanh %82 : vector<8x16xf32>
    %84 = arith.mulf %79, %83 : vector<8x16xf32>
    %85 = vector.extract_strided_slice %0 {offsets = [4, 0, 0], sizes = [1, 8, 64], strides = [1, 1, 1]} : vector<8x8x64xf32> to vector<1x8x64xf32>
    %86 = vector.shape_cast %85 : vector<1x8x64xf32> to vector<8x64xf32>
    %cst_18 = arith.constant dense<0.000000e+00> : vector<8x64xf32>
    %87 = tpu.matmul %84, %1, %cst_18 {dimension_numbers = #tpu.dot_dimension_numbers<[1], [0], [0], [1], [0, 0, 1, 1], [], []>} : vector<8x16xf32>, vector<16x64xf32>, vector<8x64xf32> -> vector<8x64xf32>
    %88 = arith.addf %86, %87 : vector<8x64xf32>
    %89 = arith.negf %88 : vector<8x64xf32>
    %90 = math.exp %89 : vector<8x64xf32>
    %cst_19 = arith.constant 1.000000e+00 : f32
    %91 = vector.broadcast %cst_19 : f32 to vector<8x64xf32>
    %92 = arith.addf %91, %90 : vector<8x64xf32>
    %93 = arith.divf %91, %92 : vector<8x64xf32>
    %94 = vector.extract_strided_slice %93 {offsets = [0, 0], sizes = [8, 16], strides = [1, 1]} : vector<8x64xf32> to vector<8x16xf32>
    %95 = vector.extract_strided_slice %93 {offsets = [0, 16], sizes = [8, 16], strides = [1, 1]} : vector<8x64xf32> to vector<8x16xf32>
    %96 = vector.extract_strided_slice %93 {offsets = [0, 32], sizes = [8, 16], strides = [1, 1]} : vector<8x64xf32> to vector<8x16xf32>
    %cst_20 = arith.constant 2.000000e+00 : f32
    %97 = vector.broadcast %cst_20 : f32 to vector<8x16xf32>
    %98 = arith.mulf %97, %96 : vector<8x16xf32>
    %cst_21 = arith.constant 1.000000e+00 : f32
    %99 = vector.broadcast %cst_21 : f32 to vector<8x16xf32>
    %100 = arith.subf %98, %99 : vector<8x16xf32>
    %101 = vector.extract_strided_slice %93 {offsets = [0, 48], sizes = [8, 16], strides = [1, 1]} : vector<8x64xf32> to vector<8x16xf32>
    %102 = arith.mulf %95, %82 : vector<8x16xf32>
    %103 = arith.mulf %94, %100 : vector<8x16xf32>
    %104 = arith.addf %102, %103 : vector<8x16xf32>
    %105 = math.tanh %104 : vector<8x16xf32>
    %106 = arith.mulf %101, %105 : vector<8x16xf32>
    %107 = vector.extract_strided_slice %0 {offsets = [5, 0, 0], sizes = [1, 8, 64], strides = [1, 1, 1]} : vector<8x8x64xf32> to vector<1x8x64xf32>
    %108 = vector.shape_cast %107 : vector<1x8x64xf32> to vector<8x64xf32>
    %cst_22 = arith.constant dense<0.000000e+00> : vector<8x64xf32>
    %109 = tpu.matmul %106, %1, %cst_22 {dimension_numbers = #tpu.dot_dimension_numbers<[1], [0], [0], [1], [0, 0, 1, 1], [], []>} : vector<8x16xf32>, vector<16x64xf32>, vector<8x64xf32> -> vector<8x64xf32>
    %110 = arith.addf %108, %109 : vector<8x64xf32>
    %111 = arith.negf %110 : vector<8x64xf32>
    %112 = math.exp %111 : vector<8x64xf32>
    %cst_23 = arith.constant 1.000000e+00 : f32
    %113 = vector.broadcast %cst_23 : f32 to vector<8x64xf32>
    %114 = arith.addf %113, %112 : vector<8x64xf32>
    %115 = arith.divf %113, %114 : vector<8x64xf32>
    %116 = vector.extract_strided_slice %115 {offsets = [0, 0], sizes = [8, 16], strides = [1, 1]} : vector<8x64xf32> to vector<8x16xf32>
    %117 = vector.extract_strided_slice %115 {offsets = [0, 16], sizes = [8, 16], strides = [1, 1]} : vector<8x64xf32> to vector<8x16xf32>
    %118 = vector.extract_strided_slice %115 {offsets = [0, 32], sizes = [8, 16], strides = [1, 1]} : vector<8x64xf32> to vector<8x16xf32>
    %cst_24 = arith.constant 2.000000e+00 : f32
    %119 = vector.broadcast %cst_24 : f32 to vector<8x16xf32>
    %120 = arith.mulf %119, %118 : vector<8x16xf32>
    %cst_25 = arith.constant 1.000000e+00 : f32
    %121 = vector.broadcast %cst_25 : f32 to vector<8x16xf32>
    %122 = arith.subf %120, %121 : vector<8x16xf32>
    %123 = vector.extract_strided_slice %115 {offsets = [0, 48], sizes = [8, 16], strides = [1, 1]} : vector<8x64xf32> to vector<8x16xf32>
    %124 = arith.mulf %117, %104 : vector<8x16xf32>
    %125 = arith.mulf %116, %122 : vector<8x16xf32>
    %126 = arith.addf %124, %125 : vector<8x16xf32>
    %127 = math.tanh %126 : vector<8x16xf32>
    %128 = arith.mulf %123, %127 : vector<8x16xf32>
    %129 = vector.extract_strided_slice %0 {offsets = [6, 0, 0], sizes = [1, 8, 64], strides = [1, 1, 1]} : vector<8x8x64xf32> to vector<1x8x64xf32>
    %130 = vector.shape_cast %129 : vector<1x8x64xf32> to vector<8x64xf32>
    %cst_26 = arith.constant dense<0.000000e+00> : vector<8x64xf32>
    %131 = tpu.matmul %128, %1, %cst_26 {dimension_numbers = #tpu.dot_dimension_numbers<[1], [0], [0], [1], [0, 0, 1, 1], [], []>} : vector<8x16xf32>, vector<16x64xf32>, vector<8x64xf32> -> vector<8x64xf32>
    %132 = arith.addf %130, %131 : vector<8x64xf32>
    %133 = arith.negf %132 : vector<8x64xf32>
    %134 = math.exp %133 : vector<8x64xf32>
    %cst_27 = arith.constant 1.000000e+00 : f32
    %135 = vector.broadcast %cst_27 : f32 to vector<8x64xf32>
    %136 = arith.addf %135, %134 : vector<8x64xf32>
    %137 = arith.divf %135, %136 : vector<8x64xf32>
    %138 = vector.extract_strided_slice %137 {offsets = [0, 0], sizes = [8, 16], strides = [1, 1]} : vector<8x64xf32> to vector<8x16xf32>
    %139 = vector.extract_strided_slice %137 {offsets = [0, 16], sizes = [8, 16], strides = [1, 1]} : vector<8x64xf32> to vector<8x16xf32>
    %140 = vector.extract_strided_slice %137 {offsets = [0, 32], sizes = [8, 16], strides = [1, 1]} : vector<8x64xf32> to vector<8x16xf32>
    %cst_28 = arith.constant 2.000000e+00 : f32
    %141 = vector.broadcast %cst_28 : f32 to vector<8x16xf32>
    %142 = arith.mulf %141, %140 : vector<8x16xf32>
    %cst_29 = arith.constant 1.000000e+00 : f32
    %143 = vector.broadcast %cst_29 : f32 to vector<8x16xf32>
    %144 = arith.subf %142, %143 : vector<8x16xf32>
    %145 = vector.extract_strided_slice %137 {offsets = [0, 48], sizes = [8, 16], strides = [1, 1]} : vector<8x64xf32> to vector<8x16xf32>
    %146 = arith.mulf %139, %126 : vector<8x16xf32>
    %147 = arith.mulf %138, %144 : vector<8x16xf32>
    %148 = arith.addf %146, %147 : vector<8x16xf32>
    %149 = math.tanh %148 : vector<8x16xf32>
    %150 = arith.mulf %145, %149 : vector<8x16xf32>
    %151 = vector.extract_strided_slice %0 {offsets = [7, 0, 0], sizes = [1, 8, 64], strides = [1, 1, 1]} : vector<8x8x64xf32> to vector<1x8x64xf32>
    %152 = vector.shape_cast %151 : vector<1x8x64xf32> to vector<8x64xf32>
    %cst_30 = arith.constant dense<0.000000e+00> : vector<8x64xf32>
    %153 = tpu.matmul %150, %1, %cst_30 {dimension_numbers = #tpu.dot_dimension_numbers<[1], [0], [0], [1], [0, 0, 1, 1], [], []>} : vector<8x16xf32>, vector<16x64xf32>, vector<8x64xf32> -> vector<8x64xf32>
    %154 = arith.addf %152, %153 : vector<8x64xf32>
    %155 = arith.negf %154 : vector<8x64xf32>
    %156 = math.exp %155 : vector<8x64xf32>
    %cst_31 = arith.constant 1.000000e+00 : f32
    %157 = vector.broadcast %cst_31 : f32 to vector<8x64xf32>
    %158 = arith.addf %157, %156 : vector<8x64xf32>
    %159 = arith.divf %157, %158 : vector<8x64xf32>
    %160 = vector.extract_strided_slice %159 {offsets = [0, 0], sizes = [8, 16], strides = [1, 1]} : vector<8x64xf32> to vector<8x16xf32>
    %161 = vector.extract_strided_slice %159 {offsets = [0, 16], sizes = [8, 16], strides = [1, 1]} : vector<8x64xf32> to vector<8x16xf32>
    %162 = vector.extract_strided_slice %159 {offsets = [0, 32], sizes = [8, 16], strides = [1, 1]} : vector<8x64xf32> to vector<8x16xf32>
    %cst_32 = arith.constant 2.000000e+00 : f32
    %163 = vector.broadcast %cst_32 : f32 to vector<8x16xf32>
    %164 = arith.mulf %163, %162 : vector<8x16xf32>
    %cst_33 = arith.constant 1.000000e+00 : f32
    %165 = vector.broadcast %cst_33 : f32 to vector<8x16xf32>
    %166 = arith.subf %164, %165 : vector<8x16xf32>
    %167 = vector.extract_strided_slice %159 {offsets = [0, 48], sizes = [8, 16], strides = [1, 1]} : vector<8x64xf32> to vector<8x16xf32>
    %168 = arith.mulf %161, %148 : vector<8x16xf32>
    %169 = arith.mulf %160, %166 : vector<8x16xf32>
    %170 = arith.addf %168, %169 : vector<8x16xf32>
    %171 = math.tanh %170 : vector<8x16xf32>
    %172 = arith.mulf %167, %171 : vector<8x16xf32>
    %c0_34 = arith.constant 0 : index
    %c0_35 = arith.constant 0 : index
    %173 = vector.load %arg2[%c0_34, %c0_35] : memref<1x16xf32, #tpu.memory_space<vmem>>, vector<1x16xf32>
    %174 = vector.broadcast %173 : vector<1x16xf32> to vector<8x16xf32>
    %175 = arith.mulf %172, %174 : vector<8x16xf32>
    %cst_36 = arith.constant dense<0.000000e+00> : vector<8xf32>
    %176 = vector.multi_reduction <add>, %175, %cst_36 [1] : vector<8x16xf32> to vector<8xf32>
    %177 = vector.shape_cast %176 : vector<8xf32> to vector<8x1xf32>
    %c0_37 = arith.constant 0 : index
    %c0_38 = arith.constant 0 : index
    %178 = memref.load %arg3[%c0_37, %c0_38] : memref<1x1xf32, #tpu.memory_space<smem>>
    %179 = vector.broadcast %178 : f32 to vector<8x1xf32>
    %180 = arith.addf %177, %179 : vector<8x1xf32>
    %c0_39 = arith.constant 0 : index
    %c0_40 = arith.constant 0 : index
    %181 = vector.load %arg4[%c0_39, %c0_40] : memref<8x1xf32, #tpu.memory_space<vmem>>, vector<8x1xf32>
    tpu.vector_store %arg4[%c0_39, %c0_40], %180 {strides = array<i32>} : memref<8x1xf32, #tpu.memory_space<vmem>>, vector<8x1xf32>,
    return
  }
}

</mosaic_0001>

<bundles_post_ra>
// kernel: tpu_custom_call.1
= control target key start
LH: loop header
LB: loop body
LE: loop exit
PB: predicated region body
PF: predicated region fallthrough
CT: control target
= control target key end

     0   :  { %10 = vsyncpa [#allocation4], 0  ;;  %s1179_s0 = inlined_call_operand.hbm [shape: f32[8,8,64], index: 0, kind: input, shape index: {}]   ;;  %s1180_s1 = inlined_call_operand.hbm [shape: f32[16,64], index: 1, kind: input, shape index: {}]   ;;  %s1181_s2 = inlined_call_operand.vmem [shape: f32[1,16], index: 2, kind: input, shape index: {}]   ;;  %s1182_s3 = inlined_call_operand.<no memory space> [shape: f32[1,1], index: 3, kind: input, shape index: {}]   ;;  %s1183_s4 = inlined_call_operand.vmem [shape: f32[8,1], index: 4, kind: output, shape index: {}]  }
   0x1   :  { %11 = vsyncpa [#allocation6], 0  ;;  %s1038_s15 = smov [#allocation3]   ;;  %s990_s19 = scalar_lea.hbm %s1179_s0, 1024 }
   0x2   :  { %s17_s16 = sshll.u32 %s1038_s15, 4  ;;  %p991_p0 = scmp.ne.s32.totalorder %s1179_s0, %s990_s19  ;;  %s18_s16 = int_to_ptr.vmem [resolvable:$true] %s17_s16 }
   0x3   :  { %p994_p1 = scmp.lt.u32.totalorder %s990_s19, %s1179_s0 }
   0x5   :  { %p996_p2 = pnand %p994_p1, %p991_p0 }
   0x7   :  { %999 = shalt.err (!%p996_p2)
}
   0x8   :  { %s1000_s24 = scalar_lea.vmem %s18_s16, 1024  ;;  %p1005_p4 = scmp.lt.s32.totalorder %s18_s16, %s18_s16 }
   0x9   :  { %p1001_p3 = scmp.ne.s32.totalorder %s18_s16, %s1000_s24  ;;  %p1006_p5 = scmp.lt.s32.totalorder %s1000_s24, %s1000_s24 }
   0xb   :  { %p1007_p6 = por %p1006_p5, %p1005_p4 }
   0xd   :  { %p1008_p7 = pnand %p1007_p6, %p1001_p3 }
   0xf   :  { %1011 = shalt.err (!%p1008_p7)
}
  0x10   :  { %s1039_s25 = smov 128   ;;  %s1040_s26 = smov 8  }
  0x11   :  { %23 = dma.hbm_to_vmem [thread:$0]  %s1179_s0, 1024, %s18_s16, [#allocation4], %s1039_s25, %s1039_s25, %s1040_s26  }
  0x12   :  { %s1041_s29 = smov [#allocation5]   ;;  %s1012_s7 = scalar_lea.hbm %s1180_s1, 256 }
  0x13   :  { %s29_s30 = sshll.u32 %s1041_s29, 4  ;;  %p1013_p8 = scmp.ne.s32.totalorder %s1180_s1, %s1012_s7  ;;  %s30_s30 = int_to_ptr.vmem [resolvable:$true] %s29_s30 }
  0x14   :  { %p1016_p9 = scmp.lt.u32.totalorder %s1012_s7, %s1180_s1 }
  0x16   :  { %p1018_p10 = pnand %p1016_p9, %p1013_p8 }
  0x18   :  { %1021 = shalt.err (!%p1018_p10)
}
  0x19   :  { %s1022_s12 = scalar_lea.vmem %s30_s30, 256  ;;  %p1027_p12 = scmp.lt.s32.totalorder %s30_s30, %s30_s30 }
  0x1a   :  { %p1023_p11 = scmp.ne.s32.totalorder %s30_s30, %s1022_s12  ;;  %p1028_p13 = scmp.lt.s32.totalorder %s1022_s12, %s1022_s12 }
  0x1c   :  { %p1029_p0 = por %p1028_p13, %p1027_p12 }
  0x1e   :  { %p1030_p1 = pnand %p1029_p0, %p1023_p11 }
  0x20   :  { %1033 = shalt.err (!%p1030_p1)
}
  0x21   :  { %35 = dma.hbm_to_vmem [thread:$0]  %s1180_s1, 256, %s30_s30, [#allocation6], %s1039_s25, %s1039_s25, %s1040_s26  }
  0x22   :  { %1034 = dma.done.wait [#allocation4], 1024  }
  0x23   :  { %1035 = vsyncadd [#allocation4], 4294966272 }
  0x24   :  { %1036 = dma.done.wait [#allocation6], 256  }
  0x25   :  { %1037 = vsyncadd [#allocation6], 4294967040  ;;  %v46_v0 = vld [vmem:[#allocation3] sm:$0xff]  ;;  %s1042_s14 = smov 96   ;;  %v55_v10 = vld [vmem:[#allocation5 + $0x8] sm:$0xff]  ;;  %v1043_v11 = vmov 0.0|0.0  }
  0x26   :  { %v815_v1 = vmul.f32 -1.442695, %v46_v0  ;;  %v54_v9 = vld [vmem:[#allocation5] sm:$0xff]  ;;  %909 = vmatprep.subr.bf16.mxu0 %v1043_v11  ;;  %vm1044_vm0 = vmmov 0   ;;  %v1045_v13 = vmov 0.0   ;;  %912 = vmatprep.subr.bf16.mxu1 %v1043_v11  ;;  %s1046_s1 = smov 48  }
  0x27   :  { %v1101_v12 = vpack.c.bf16 %v55_v10, %v54_v9  ;;  %864 = vmatprep.mubr.msk.f32.mxu0 %vm1044_vm0, %v1045_v13  ;;  %871 = vmatprep.mubr.msk.f32.mxu1 %vm1044_vm0, %v1045_v13  ;;  %s1047_s15 = smov 16   ;;  %s1048_s16 = smov 80   ;;  %vm78_vm1 = vcmask 130048   ;;  %v47_v18 = vld [vmem:[#allocation3 + $0x8] sm:$0xff]  ;;  %v48_v38 = vld [vmem:[#allocation3 + $0x10] sm:$0xff]  ;;  %v49_v57 = vld [vmem:[#allocation3 + $0x18] sm:$0xff] }
  0x28   :  { %942 = vpow2.f32 %v815_v1  ;;  %s1049_s17 = smov 32   ;;  %vm807_vm2 = vcmask 7168  }
  0x29   :  { %911 = vmatpush3.bf16.msra.mxu0 %v1101_v12  ;;  %914 = vmatpush3.bf16.msra.mxu1 %v1101_v12 }
  0x2a   :  { %915 = vmatprep.subr.bf16.mxu0 %v1043_v11  ;;  %918 = vmatprep.subr.bf16.mxu1 %v1043_v11 }
  0x32   :  { %v943_v2 = vpop.eup %942 }
  0x33   :  { %v59_v3 = vadd.f32 1.0, %v943_v2 }
  0x35   :  { %944 = vrcp.f32 %v59_v3 }
  0x3f   :  { %v945_v4 = vpop.eup %944 }
  0x40   :  { %v62_v5 = vmul.f32 2.0, %v945_v4 }
  0x42   :  { %v816_v6 = vadd.f32 -1.0, %v62_v5 }
  0x44   :  { %65 = vrot.lane.b32.xlu0 %v816_v6, %s1042_s14 }
  0xb6   :  { %v66_v7 = vpop.permute.xlu0 %65 }
  0xb7   :  { %v68_v8 = vmul.f32 %v945_v4, %v66_v7 }
  0xb9   :  { %946 = vtanh.f32 %v68_v8 }
  0xc3   :  { %v947_v14 = vpop.eup %946 }
  0xc4   :  { %71 = vrot.lane.b32.xlu0 %v947_v14, %s1046_s1  ;;  %v50_v14 = vld [vmem:[#allocation3 + $0x20] sm:$0xff] }
  0xc8   :  { %161 = vrot.lane.b32.xlu0 %v68_v8, %s1047_s15 }
 0x136   :  { %v72_v15 = vpop.permute.xlu0 %71 }
 0x137   :  { %v74_v16 = vmul.f32 %v945_v4, %v72_v15 }
 0x139   :  { %76 = vrot.lane.b32.xlu1 %v74_v16, %s1048_s16 }
 0x13a   :  { %v162_v30 = vpop.permute.xlu0 %161 }
 0x1ab   :  { %v77_v17 = vpop.permute.xlu1 %76 }
 0x1ac   :  { %865 = vmatmul.mubr.msk.f32.vlgmr.msra.gmra.mrb[0].mxu0 %vm78_vm1, %v77_v17 }
 0x1ad   :  { %917 = vmatpush3.bf16.msra.mxu0 %v1101_v12  ;;  %878 = vmatprep.mubr.msk.f32.mxu0 %vm1044_vm0, %v1045_v13 }
 0x1ae   :  { %921 = vmatprep.subr.bf16.mxu0 %v1043_v11 }
 0x27f   :  { %v147_v19 = vpop.f32.mrb[0].mxu0 }
 0x280   :  { %v151_v20 = vadd.f32 %v147_v19, %v47_v18  ;;  %v866_v21 = vpop.f32.mrb[1].mxu0 }
 0x282   :  { %v818_v22 = vmul.f32 -1.442695, %v151_v20 }
 0x284   :  { %948 = vpow2.f32 %v818_v22 }
 0x28e   :  { %v949_v23 = vpop.eup %948 }
 0x28f   :  { %v155_v24 = vadd.f32 1.0, %v949_v23 }
 0x291   :  { %950 = vrcp.f32 %v155_v24 }
 0x29b   :  { %v951_v25 = vpop.eup %950 }
 0x29c   :  { %v158_v26 = vmul.f32 2.0, %v951_v25  ;;  %v164_v31 = vmul.f32 %v951_v25, %v162_v30 }
 0x29e   :  { %v819_v27 = vadd.f32 -1.0, %v158_v26 }
 0x2a0   :  { %166 = vrot.lane.b32.xlu1 %v819_v27, %s1042_s14 }
 0x312   :  { %v167_v28 = vpop.permute.xlu1 %166 }
 0x313   :  { %v169_v29 = vmul.f32 %v951_v25, %v167_v28 }
 0x315   :  { %171 = vrot.lane.b32.xlu1 %v169_v29, %s1047_s15 }
 0x387   :  { %v172_v32 = vpop.permute.xlu1 %171 }
 0x388   :  { %v174_v33 = vadd.f32 %v172_v32, %v164_v31 }
 0x38a   :  { %952 = vtanh.f32 %v174_v33 }
 0x394   :  { %v953_v34 = vpop.eup %952 }
 0x395   :  { %177 = vrot.lane.b32.xlu0 %v953_v34, %s1049_s17 }
 0x407   :  { %v178_v35 = vpop.permute.xlu0 %177 }
 0x408   :  { %v180_v36 = vmul.f32 %v951_v25, %v178_v35 }
 0x40a   :  { %182 = vrot.lane.b32.xlu1 %v180_v36, %s1048_s16 }
 0x47c   :  { %v183_v37 = vpop.permute.xlu1 %182 }
 0x47d   :  { %872 = vmatmul.mubr.msk.f32.vlgmr.msra.gmra.mrb[0].mxu1 %vm78_vm1, %v183_v37 }
 0x47e   :  { %920 = vmatpush3.bf16.msra.mxu1 %v1101_v12  ;;  %885 = vmatprep.mubr.msk.f32.mxu1 %vm1044_vm0, %v1045_v13 }
 0x47f   :  { %924 = vmatprep.subr.bf16.mxu1 %v1043_v11 }
 0x550   :  { %v252_v39 = vpop.f32.mrb[0].mxu1 }
 0x551   :  { %v256_v40 = vadd.f32 %v252_v39, %v48_v38  ;;  %v873_v41 = vpop.f32.mrb[1].mxu1 }
 0x553   :  { %v821_v42 = vmul.f32 -1.442695, %v256_v40 }
 0x555   :  { %954 = vpow2.f32 %v821_v42 }
 0x55f   :  { %v955_v43 = vpop.eup %954 }
 0x560   :  { %v260_v44 = vadd.f32 1.0, %v955_v43 }
 0x562   :  { %956 = vrcp.f32 %v260_v44 }
 0x56c   :  { %v957_v45 = vpop.eup %956 }
 0x56d   :  { %v263_v46 = vmul.f32 2.0, %v957_v45  ;;  %v265_v50 = vmul.f32 %v957_v45, %v174_v33  ;;  %v51_v33 = vld [vmem:[#allocation3 + $0x28] sm:$0xff] }
 0x56f   :  { %v822_v47 = vadd.f32 -1.0, %v263_v46 }
 0x571   :  { %267 = vrot.lane.b32.xlu0 %v822_v47, %s1042_s14 }
 0x5e3   :  { %v268_v48 = vpop.permute.xlu0 %267 }
 0x5e4   :  { %v270_v49 = vmul.f32 %v957_v45, %v268_v48 }
 0x5e6   :  { %272 = vrot.lane.b32.xlu1 %v270_v49, %s1047_s15 }
 0x658   :  { %v273_v51 = vpop.permute.xlu1 %272 }
 0x659   :  { %v275_v52 = vadd.f32 %v273_v51, %v265_v50  ;;  %v52_v50 = vld [vmem:[#allocation3 + $0x30] sm:$0xff] }
 0x65b   :  { %958 = vtanh.f32 %v275_v52 }
 0x665   :  { %v959_v53 = vpop.eup %958 }
 0x666   :  { %278 = vrot.lane.b32.xlu0 %v959_v53, %s1049_s17 }
 0x6d8   :  { %v279_v54 = vpop.permute.xlu0 %278 }
 0x6d9   :  { %v281_v55 = vmul.f32 %v957_v45, %v279_v54 }
 0x6db   :  { %283 = vrot.lane.b32.xlu1 %v281_v55, %s1048_s16 }
 0x74d   :  { %v284_v56 = vpop.permute.xlu1 %283 }
 0x74e   :  { %879 = vmatmul.mubr.msk.f32.vlgmr.msra.gmra.mrb[2].mxu0 %vm78_vm1, %v284_v56 }
 0x74f   :  { %923 = vmatpush3.bf16.msra.mxu0 %v1101_v12  ;;  %892 = vmatprep.mubr.msk.f32.mxu0 %vm1044_vm0, %v1045_v13 }
 0x750   :  { %927 = vmatprep.subr.bf16.mxu0 %v1043_v11 }
 0x821   :  { %v353_v58 = vpop.f32.mrb[2].mxu0 }
 0x822   :  { %v357_v59 = vadd.f32 %v353_v58, %v49_v57  ;;  %v880_v60 = vpop.f32.mrb[3].mxu0 }
 0x824   :  { %v824_v61 = vmul.f32 -1.442695, %v357_v59 }
 0x826   :  { %960 = vpow2.f32 %v824_v61 }
 0x830   :  { %v961_v62 = vpop.eup %960 }
 0x831   :  { %v361_v63 = vadd.f32 1.0, %v961_v62 }
 0x833   :  { %962 = vrcp.f32 %v361_v63 }
 0x83d   :  { %v963_v0 = vpop.eup %962 }
 0x83e   :  { %v364_v1 = vmul.f32 2.0, %v963_v0  ;;  %v366_v5 = vmul.f32 %v963_v0, %v275_v52 }
 0x840   :  { %v825_v2 = vadd.f32 -1.0, %v364_v1 }
 0x842   :  { %368 = vrot.lane.b32.xlu0 %v825_v2, %s1042_s14 }
 0x8b4   :  { %v369_v3 = vpop.permute.xlu0 %368 }
 0x8b5   :  { %v371_v4 = vmul.f32 %v963_v0, %v369_v3 }
 0x8b7   :  { %373 = vrot.lane.b32.xlu1 %v371_v4, %s1047_s15 }
 0x929   :  { %v374_v6 = vpop.permute.xlu1 %373 }
 0x92a   :  { %v376_v7 = vadd.f32 %v374_v6, %v366_v5  ;;  %v53_v5 = vld [vmem:[#allocation3 + $0x38] sm:$0xff] }
 0x92c   :  { %964 = vtanh.f32 %v376_v7 }
 0x936   :  { %v965_v8 = vpop.eup %964 }
 0x937   :  { %379 = vrot.lane.b32.xlu0 %v965_v8, %s1049_s17 }
 0x9a9   :  { %v380_v9 = vpop.permute.xlu0 %379 }
 0x9aa   :  { %v382_v10 = vmul.f32 %v963_v0, %v380_v9 }
 0x9ac   :  { %384 = vrot.lane.b32.xlu1 %v382_v10, %s1048_s16 }
 0xa1e   :  { %v385_v11 = vpop.permute.xlu1 %384 }
 0xa1f   :  { %886 = vmatmul.mubr.msk.f32.vlgmr.msra.gmra.mrb[2].mxu1 %vm78_vm1, %v385_v11 }
 0xa20   :  { %926 = vmatpush3.bf16.msra.mxu1 %v1101_v12  ;;  %899 = vmatprep.mubr.msk.f32.mxu1 %vm1044_vm0, %v1045_v13 }
 0xaf2   :  { %v454_v15 = vpop.f32.mrb[2].mxu1 }
 0xaf3   :  { %v458_v16 = vadd.f32 %v454_v15, %v50_v14  ;;  %v887_v17 = vpop.f32.mrb[3].mxu1 }
 0xaf5   :  { %v827_v18 = vmul.f32 -1.442695, %v458_v16 }
 0xaf7   :  { %966 = vpow2.f32 %v827_v18 }
 0xb01   :  { %v967_v19 = vpop.eup %966 }
 0xb02   :  { %v462_v20 = vadd.f32 1.0, %v967_v19  ;;  %v838_v19 = vld [vmem:[%s1181_s2] ss:$0 sm:$0xff] }
 0xb04   :  { %968 = vrcp.f32 %v462_v20 }
 0xb0e   :  { %v969_v21 = vpop.eup %968 }
 0xb0f   :  { %v465_v22 = vmul.f32 2.0, %v969_v21  ;;  %v467_v26 = vmul.f32 %v969_v21, %v376_v7 }
 0xb11   :  { %v828_v23 = vadd.f32 -1.0, %v465_v22 }
 0xb13   :  { %469 = vrot.lane.b32.xlu0 %v828_v23, %s1042_s14 }
 0xb85   :  { %v470_v24 = vpop.permute.xlu0 %469 }
 0xb86   :  { %v472_v25 = vmul.f32 %v969_v21, %v470_v24 }
 0xb88   :  { %474 = vrot.lane.b32.xlu1 %v472_v25, %s1047_s15 }
 0xbfa   :  { %v475_v27 = vpop.permute.xlu1 %474 }
 0xbfb   :  { %v477_v28 = vadd.f32 %v475_v27, %v467_v26 }
 0xbfd   :  { %970 = vtanh.f32 %v477_v28 }
 0xc07   :  { %v971_v29 = vpop.eup %970 }
 0xc08   :  { %480 = vrot.lane.b32.xlu0 %v971_v29, %s1049_s17 }
 0xc7a   :  { %v481_v30 = vpop.permute.xlu0 %480 }
 0xc7b   :  { %v483_v31 = vmul.f32 %v969_v21, %v481_v30  ;;  %v805_v30 = vstv %s1182_s3 }
 0xc7d   :  { %485 = vrot.lane.b32.xlu1 %v483_v31, %s1048_s16 }
 0xcef   :  { %v486_v32 = vpop.permute.xlu1 %485 }
 0xcf0   :  { %893 = vmatmul.mubr.msk.f32.vlgmr.msra.gmra.mrb[4].mxu0 %vm78_vm1, %v486_v32 }
 0xcf1   :  { %929 = vmatpush3.bf16.msra.mxu0 %v1101_v12  ;;  %906 = vmatprep.mubr.msk.f32.mxu0 %vm1044_vm0, %v1045_v13 }
 0xdc3   :  { %v555_v34 = vpop.f32.mrb[4].mxu0 }
 0xdc4   :  { %v559_v35 = vadd.f32 %v555_v34, %v51_v33  ;;  %v894_v36 = vpop.f32.mrb[5].mxu0 }
 0xdc6   :  { %v830_v37 = vmul.f32 -1.442695, %v559_v35 }
 0xdc8   :  { %972 = vpow2.f32 %v830_v37 }
 0xdd2   :  { %v973_v38 = vpop.eup %972 }
 0xdd3   :  { %v563_v39 = vadd.f32 1.0, %v973_v38 }
 0xdd5   :  { %974 = vrcp.f32 %v563_v39 }
 0xddf   :  { %v975_v40 = vpop.eup %974 }
 0xde0   :  { %v566_v41 = vmul.f32 2.0, %v975_v40  ;;  %v568_v12 = vmul.f32 %v975_v40, %v477_v28 }
 0xde2   :  { %v831_v42 = vadd.f32 -1.0, %v566_v41 }
 0xde4   :  { %570 = vrot.lane.b32.xlu0 %v831_v42, %s1042_s14 }
 0xe56   :  { %v571_v43 = vpop.permute.xlu0 %570 }
 0xe57   :  { %v573_v44 = vmul.f32 %v975_v40, %v571_v43 }
 0xe59   :  { %575 = vrot.lane.b32.xlu1 %v573_v44, %s1047_s15 }
 0xecb   :  { %v576_v13 = vpop.permute.xlu1 %575 }
 0xecc   :  { %v578_v45 = vadd.f32 %v576_v13, %v568_v12 }
 0xece   :  { %976 = vtanh.f32 %v578_v45 }
 0xed8   :  { %v977_v46 = vpop.eup %976 }
 0xed9   :  { %581 = vrot.lane.b32.xlu0 %v977_v46, %s1049_s17 }
 0xf4b   :  { %v582_v47 = vpop.permute.xlu0 %581 }
 0xf4c   :  { %v584_v48 = vmul.f32 %v975_v40, %v582_v47 }
 0xf4e   :  { %586 = vrot.lane.b32.xlu1 %v584_v48, %s1048_s16 }
 0xfc0   :  { %v587_v49 = vpop.permute.xlu1 %586 }
 0xfc1   :  { %900 = vmatmul.mubr.msk.f32.vlgmr.msra.gmra.mrb[4].mxu1 %vm78_vm1, %v587_v49 }
0x1094   :  { %v656_v51 = vpop.f32.mrb[4].mxu1 }
0x1095   :  { %v660_v52 = vadd.f32 %v656_v51, %v52_v50  ;;  %v901_v53 = vpop.f32.mrb[5].mxu1 }
0x1097   :  { %v833_v54 = vmul.f32 -1.442695, %v660_v52 }
0x1099   :  { %978 = vpow2.f32 %v833_v54 }
0x10a3   :  { %v979_v55 = vpop.eup %978 }
0x10a4   :  { %v664_v56 = vadd.f32 1.0, %v979_v55 }
0x10a6   :  { %980 = vrcp.f32 %v664_v56 }
0x10b0   :  { %v981_v57 = vpop.eup %980 }
0x10b1   :  { %v667_v58 = vmul.f32 2.0, %v981_v57  ;;  %v669_v62 = vmul.f32 %v981_v57, %v578_v45 }
0x10b3   :  { %v834_v59 = vadd.f32 -1.0, %v667_v58 }
0x10b5   :  { %671 = vrot.lane.b32.xlu0 %v834_v59, %s1042_s14 }
0x1127   :  { %v672_v60 = vpop.permute.xlu0 %671 }
0x1128   :  { %v674_v61 = vmul.f32 %v981_v57, %v672_v60 }
0x112a   :  { %676 = vrot.lane.b32.xlu1 %v674_v61, %s1047_s15 }
0x119c   :  { %v677_v63 = vpop.permute.xlu1 %676 }
0x119d   :  { %v679_v0 = vadd.f32 %v677_v63, %v669_v62 }
0x119f   :  { %982 = vtanh.f32 %v679_v0 }
0x11a9   :  { %v983_v1 = vpop.eup %982 }
0x11aa   :  { %682 = vrot.lane.b32.xlu0 %v983_v1, %s1049_s17 }
0x121c   :  { %v683_v2 = vpop.permute.xlu0 %682 }
0x121d   :  { %v685_v3 = vmul.f32 %v981_v57, %v683_v2 }
0x121f   :  { %687 = vrot.lane.b32.xlu1 %v685_v3, %s1048_s16 }
0x1291   :  { %v688_v4 = vpop.permute.xlu1 %687 }
0x1292   :  { %907 = vmatmul.mubr.msk.f32.vlgmr.msra.gmra.mrb[6].mxu0 %vm78_vm1, %v688_v4 }
0x1365   :  { %v757_v6 = vpop.f32.mrb[6].mxu0 }
0x1366   :  { %v761_v7 = vadd.f32 %v757_v6, %v53_v5  ;;  %v908_v8 = vpop.f32.mrb[7].mxu0 }
0x1368   :  { %v836_v9 = vmul.f32 -1.442695, %v761_v7 }
0x136a   :  { %984 = vpow2.f32 %v836_v9 }
0x1374   :  { %v985_v10 = vpop.eup %984 }
0x1375   :  { %v765_v11 = vadd.f32 1.0, %v985_v10 }
0x1377   :  { %986 = vrcp.f32 %v765_v11 }
0x1381   :  { %v987_v14 = vpop.eup %986 }
0x1382   :  { %v768_v15 = vmul.f32 2.0, %v987_v14  ;;  %v770_v20 = vmul.f32 %v987_v14, %v679_v0 }
0x1384   :  { %v837_v16 = vadd.f32 -1.0, %v768_v15 }
0x1386   :  { %772 = vrot.lane.b32.xlu0 %v837_v16, %s1042_s14 }
0x13f8   :  { %v773_v17 = vpop.permute.xlu0 %772 }
0x13f9   :  { %v775_v18 = vmul.f32 %v987_v14, %v773_v17 }
0x13fb   :  { %777 = vrot.lane.b32.xlu1 %v775_v18, %s1047_s15 }
0x13ff   :  { %793 = vrot.lane.b32.xlu1 %v838_v19, %s1046_s1 }
0x146d   :  { %v778_v21 = vpop.permute.xlu1 %777 }
0x146e   :  { %v780_v22 = vadd.f32 %v778_v21, %v770_v20 }
0x1470   :  { %988 = vtanh.f32 %v780_v22 }
0x1471   :  { %v794_v25 = vpop.permute.xlu1 %793 }
0x147a   :  { %v989_v23 = vpop.eup %988 }
0x147b   :  { %783 = vrot.lane.b32.xlu0 %v989_v23, %s1049_s17 }
0x14ed   :  { %v784_v24 = vpop.permute.xlu0 %783 }
0x14ee   :  { %v786_v26 = vmul.f32 %v987_v14, %v784_v24 }
0x14f0   :  { %v796_v27 = vmul.f32 %v794_v25, %v786_v26 }
0x14f2   :  { %798 = vrot.lane.b32.xlu0 %v796_v27, %s1048_s16 }
0x1564   :  { %v799_v28 = vpop.permute.xlu0 %798 }
0x1565   :  { %v801_v29 = vsel %vm78_vm1, %v799_v28, 0.0 }
0x1566   :  { %802 = vadd.xlane.f32.xlu1 %v801_v29 }
0x15f3   :  { %v803_v31 = vpop.xlane.xlu1 %802 }
0x15f4   :  { %v806_v32 = vadd.f32 %v805_v30, %v803_v31 }
0x15f6   :  { %808 = vst.msk [vmem:[%s1183_s4] sm:$0xff] %vm807_vm2, %v806_v32 }
0x15f7   :  { %813 = vsyncpa [#allocation4], 1 }
0x15f8   :  { %814 = vsyncpa [#allocation6], 1 }

</bundles_post_ra>
